<compile_context>
chip_gen: v6e
topology: v6e:2x2x1
jax: 0.10.0
libtpu: 0.0.40
codegen_flags: <defaults>
</compile_context>

<pallas_src>
import functools
import math

import jax
import jax.numpy as jnp
from jax import lax
from jax.experimental import pallas as pl
from jax.experimental.pallas import tpu as pltpu


def _bert_attention_kernel(x_ref, mask_ref, wqkv_ref, bqkv_ref, wo_ref, bo_ref,
                           g_ref, beta_ref, o_ref, *, num_heads, head_dim):
    # x_ref:    (1, S, H)  one batch element's tokens (stored dtype: f32 or bf16)
    # mask_ref: (1, 1, S)  additive attention mask (f32, 0 / -10000)
    # wqkv_ref: (H, 3H)    fused [Wq^T*scale | Wk^T | Wv^T]   (stored dtype)
    # bqkv_ref: (1, 3H)    fused [bq*scale | bk | bv]         (f32)
    # wo_ref:   (H, H)     output projection Wo^T             (stored dtype)
    # bo_ref:   (1, H)     output bias                        (f32)
    # g_ref:    (1, H)     LayerNorm gamma                    (f32)
    # beta_ref: (1, H)     LayerNorm beta                     (f32)
    S, H = x_ref.shape[-2], x_ref.shape[-1]
    mxu_dtype = x_ref.dtype

    x = x_ref[0]                                   # (S, H) stored dtype
    mask = mask_ref[...]                           # (1, 1, S) f32 -> broadcasts over (nh, S, S)

    # Fused QKV projection on the MXU, f32 accumulation.  The 1/sqrt(head_dim)
    # attention scale is already folded into Wq / bq by the wrapper.
    qkv = jnp.dot(x, wqkv_ref[...], preferred_element_type=jnp.float32)
    qkv = qkv + bqkv_ref[...].astype(jnp.float32)  # (S, 3H) f32

    # One relayout per tensor into the heads-batched (nh, S, d) layout:
    #   2D transpose (S,3H)->(3H,S), free leading-dim split (H,S)->(nh,d,S),
    #   batched minor transpose (nh,d,S)->(nh,S,d).
    qkv_t = qkv.T                                  # (3H, S) f32

    def heads(lo):
        t = qkv_t[lo:lo + H, :].reshape(num_heads, head_dim, S)
        return jnp.swapaxes(t, 1, 2).astype(mxu_dtype)   # (nh, S, d)

    q = heads(0)
    k = heads(H)
    v = heads(2 * H)

    # scores[h] = (scaled Q_h) @ K_h^T, heads as the MXU batch dimension.
    s = jnp.einsum('hqd,hkd->hqk', q, k,
                   preferred_element_type=jnp.float32)    # (nh, S, S) f32
    s = s + mask                                          # additive mask over key positions

    # Unnormalized softmax; normalization folded in after the PV matmul
    # ((S, d) multiply instead of an (S, S) divide), reciprocal on the EUP.
    m = jnp.max(s, axis=-1, keepdims=True)
    p = jnp.exp(s - m)                                    # (nh, S, S) f32
    rowsum = jnp.sum(p, axis=-1, keepdims=True)           # (nh, S, 1)

    ctx_h = jnp.einsum('hqk,hkd->hqd', p.astype(mxu_dtype), v,
                       preferred_element_type=jnp.float32)        # (nh, S, d) f32
    ctx_h = ctx_h * pl.reciprocal(rowsum, approx=True)

    # One relayout back to (S, H): batched minor transpose, free leading merge, 2D transpose.
    ctx = jnp.swapaxes(ctx_h, 1, 2).reshape(H, S).T       # (S, H) f32

    # Output projection + residual + LayerNorm (eps = 1e-12); post-matmul math in f32.
    out = jnp.dot(ctx.astype(wo_ref.dtype), wo_ref[...],
                  preferred_element_type=jnp.float32)
    out = out + bo_ref[...].astype(jnp.float32) + x.astype(jnp.float32)

    # Single-sweep LayerNorm statistics (mean and mean-of-squares, independent reductions).
    inv_h = jnp.float32(1.0 / H)
    mean = jnp.sum(out, axis=-1, keepdims=True) * inv_h
    mean_sq = jnp.sum(out * out, axis=-1, keepdims=True) * inv_h
    var = jnp.maximum(mean_sq - mean * mean, 0.0)
    y = (out - mean) * lax.rsqrt(var + 1e-12)
    y = y * g_ref[...].astype(jnp.float32) + beta_ref[...].astype(jnp.float32)

    o_ref[0] = y.astype(o_ref.dtype)


def _pick_vmem_limit():
    """Per-generation scoped-VMEM budget with headroom (~half of physical, 32 MiB floor)."""
    default = 32 * 1024 * 1024
    try:
        cap = int(getattr(pltpu.get_tpu_info(), "vmem_capacity_bytes", 0))
    except Exception:  # hardware introspection unavailable; keep the known-safe floor
        cap = 0
    if cap <= 0:
        return default
    return max(default, min(cap // 2, 96 * 1024 * 1024))


def bert_attention(x, attn_mask, wq, bq, wk, bk, wv, bv, wo, bo, gamma, beta, *,
                   num_heads, compute_dtype=None):
    """x: [B, S, H]; attn_mask: [B, S] additive (0 / -10000);
    wq/wk/wv/wo: [H, H] in PyTorch (out, in) layout; biases/gamma/beta: [H].
    compute_dtype=jnp.bfloat16 feeds bf16 operands to the MXU (recommended on v6e/v7x);
    accumulation and softmax/LayerNorm math stay in f32 inside the kernel."""
    B, S, H = x.shape
    assert H % num_heads == 0
    head_dim = H // num_heads
    scale = 1.0 / math.sqrt(head_dim)

    # PyTorch Linear stores (out, in); transpose to (in, out) and fuse Q/K/V.
    # Fold the 1/sqrt(head_dim) attention scale into Wq / bq here (zero in-kernel cost).
    wqkv = jnp.concatenate([wq.T * scale, wk.T, wv.T], axis=1)           # (H, 3H)
    bqkv = jnp.concatenate([bq * scale, bk, bv]).reshape(1, 3 * H).astype(jnp.float32)
    wo_t = wo.T                                                          # (H, H)

    if compute_dtype is not None:
        x = x.astype(compute_dtype)
        wqkv = wqkv.astype(compute_dtype)
        wo_t = wo_t.astype(compute_dtype)

    # Keep S sublane-aligned (multiple of 8); real workloads should use S a multiple of
    # 128 so the (S, S) score tiles and output stores are lane-dense.
    S_pad = ((S + 7) // 8) * 8
    if S_pad != S:
        x = jnp.pad(x, ((0, 0), (0, S_pad - S), (0, 0)))
        attn_mask = jnp.pad(attn_mask, ((0, 0), (0, S_pad - S)),
                            constant_values=-10000.0)

    mask = attn_mask.reshape(B, 1, S_pad).astype(jnp.float32)
    bo2 = bo.reshape(1, H).astype(jnp.float32)
    g2 = gamma.reshape(1, H).astype(jnp.float32)
    b2 = beta.reshape(1, H).astype(jnp.float32)

    kernel = functools.partial(_bert_attention_kernel,
                               num_heads=num_heads, head_dim=head_dim)

    out = pl.pallas_call(
        kernel,
        out_shape=jax.ShapeDtypeStruct((B, S_pad, H), x.dtype),
        grid_spec=pltpu.PrefetchScalarGridSpec(
            num_scalar_prefetch=0,
            grid=(B,),
            in_specs=[
                pl.BlockSpec((1, S_pad, H), lambda b: (b, 0, 0)),   # x (per batch element)
                pl.BlockSpec((1, 1, S_pad), lambda b: (b, 0, 0)),   # mask (per batch element)
                pl.BlockSpec((H, 3 * H), lambda b: (0, 0)),         # fused QKV weight (grid-invariant)
                pl.BlockSpec((1, 3 * H), lambda b: (0, 0)),         # fused QKV bias
                pl.BlockSpec((H, H), lambda b: (0, 0)),             # Wo^T
                pl.BlockSpec((1, H), lambda b: (0, 0)),             # bo
                pl.BlockSpec((1, H), lambda b: (0, 0)),             # LN gamma
                pl.BlockSpec((1, H), lambda b: (0, 0)),             # LN beta
            ],
            out_specs=pl.BlockSpec((1, S_pad, H), lambda b: (b, 0, 0)),
        ),
        compiler_params=pltpu.CompilerParams(
            dimension_semantics=("parallel",),        # batch grid splits across TCs (v7x megacore)
            vmem_limit_bytes=_pick_vmem_limit(),
        ),
    )(x, mask, wqkv, bqkv, wo_t, bo2, g2, b2)

    return out[:, :S, :] if S_pad != S else out


def _reference(x, mask4d, wq, bq, wk, bk, wv, bv, wo, bo, gamma, beta, num_heads):
    B, S, H = x.shape
    hd = H // num_heads
    q = (x @ wq.T + bq).reshape(B, S, num_heads, hd).transpose(0, 2, 1, 3)
    k = (x @ wk.T + bk).reshape(B, S, num_heads, hd).transpose(0, 2, 1, 3)
    v = (x @ wv.T + bv).reshape(B, S, num_heads, hd).transpose(0, 2, 1, 3)
    scores = jnp.einsum('bhqd,bhkd->bhqk', q, k) / math.sqrt(hd)
    scores = scores + mask4d
    probs = jax.nn.softmax(scores, axis=-1)
    ctx = jnp.einsum('bhqk,bhkd->bhqd', probs, v)
    ctx = ctx.transpose(0, 2, 1, 3).reshape(B, S, H)
    out = ctx @ wo.T + bo + x
    mean = jnp.mean(out, axis=-1, keepdims=True)
    var = jnp.mean((out - mean) ** 2, axis=-1, keepdims=True)
    out = (out - mean) / jnp.sqrt(var + 1e-12)
    return out * gamma + beta


if __name__ == "__main__":
    # Small BERT-ish config: batch=2, seq=8, hidden=128, 4 heads (head_dim=32).
    batch, seq, hidden, num_heads = 2, 8, 128, 4

    key = jax.random.PRNGKey(0)
    ks = jax.random.split(key, 11)

    hidden_states = jax.random.normal(ks[0], (batch, seq, hidden), dtype=jnp.float32)

    def linear_params(kw, kb):
        w = jax.random.normal(kw, (hidden, hidden), dtype=jnp.float32) * 0.02  # (out, in)
        b = jax.random.normal(kb, (hidden,), dtype=jnp.float32) * 0.02
        return w, b

    wq, bq = linear_params(ks[1], ks[2])
    wk, bk = linear_params(ks[3], ks[4])
    wv, bv = linear_params(ks[5], ks[6])
    wo, bo = linear_params(ks[7], ks[8])
    gamma = 1.0 + 0.1 * jax.random.normal(ks[9], (hidden,), dtype=jnp.float32)
    beta = 0.1 * jax.random.normal(ks[10], (hidden,), dtype=jnp.float32)

    # BERT-style additive attention mask: 0 for valid tokens, -10000 for padding.
    valid = jnp.ones((batch, seq), dtype=jnp.float32)
    valid = valid.at[1, seq - 2:].set(0.0)       # last two tokens of batch 1 are padding
    attn_mask = (1.0 - valid) * -10000.0          # (B, S)

    ref = _reference(hidden_states, attn_mask.reshape(batch, 1, 1, seq),
                     wq, bq, wk, bk, wv, bv, wo, bo, gamma, beta, num_heads)

    # f32 path.
    out_f32 = bert_attention(hidden_states, attn_mask,
                             wq, bq, wk, bk, wv, bv, wo, bo, gamma, beta,
                             num_heads=num_heads)
    jax.block_until_ready(out_f32)
    err_f32 = float(jnp.max(jnp.abs(out_f32 - ref)))
    assert err_f32 < 1e-2, f"f32 max abs err {err_f32}"

    # bf16 operands into the MXU (full-rate path), f32 accumulation inside the kernel.
    out_bf16 = bert_attention(hidden_states, attn_mask,
                              wq, bq, wk, bk, wv, bv, wo, bo, gamma, beta,
                              num_heads=num_heads, compute_dtype=jnp.bfloat16)
    jax.block_until_ready(out_bf16)
    err_bf16 = float(jnp.max(jnp.abs(out_bf16.astype(jnp.float32) - ref)))
    assert err_bf16 < 2e-1, f"bf16 max abs err {err_bf16}"

    print("KERNEL_OK")
</pallas_src>

<mosaic_0001>
module attributes {stable_mosaic.version = 11 : i64} {
  func.func @_bert_attention_kernel(%arg0: i32, %arg1: memref<1x8x128xf32, #tpu.memory_space<vmem>>, %arg2: memref<1x1x8xf32, #tpu.memory_space<vmem>>, %arg3: memref<128x384xf32, #tpu.memory_space<vmem>>, %arg4: memref<1x384xf32, #tpu.memory_space<vmem>>, %arg5: memref<128x128xf32, #tpu.memory_space<vmem>>, %arg6: memref<1x128xf32, #tpu.memory_space<vmem>>, %arg7: memref<1x128xf32, #tpu.memory_space<vmem>>, %arg8: memref<1x128xf32, #tpu.memory_space<vmem>>, %arg9: memref<1x8x128xf32, #tpu.memory_space<vmem>>) attributes {dimension_semantics = [#tpu.dimension_semantics<parallel>], iteration_bounds = array<i64: 2>, scalar_prefetch = 0 : i64, scratch_operands = 0 : i64, tpu.core_type = #tpu.core_type<tc>, window_params = [{transform_indices = @transform_0, window_bounds = array<i64: 1, 8, 128>}, {transform_indices = @transform_1, window_bounds = array<i64: 1, 1, 8>}, {pipeline_mode = #tpu.pipeline_mode<synchronous>, transform_indices = @transform_2, window_bounds = array<i64: 128, 384>}, {pipeline_mode = #tpu.pipeline_mode<synchronous>, transform_indices = @transform_3, window_bounds = array<i64: 1, 384>}, {pipeline_mode = #tpu.pipeline_mode<synchronous>, transform_indices = @transform_4, window_bounds = array<i64: 128, 128>}, {pipeline_mode = #tpu.pipeline_mode<synchronous>, transform_indices = @transform_5, window_bounds = array<i64: 1, 128>}, {pipeline_mode = #tpu.pipeline_mode<synchronous>, transform_indices = @transform_6, window_bounds = array<i64: 1, 128>}, {pipeline_mode = #tpu.pipeline_mode<synchronous>, transform_indices = @transform_7, window_bounds = array<i64: 1, 128>}, {transform_indices = @transform_8, window_bounds = array<i64: 1, 8, 128>}]} {
    %c0 = arith.constant 0 : index
    %c0_0 = arith.constant 0 : index
    %c0_1 = arith.constant 0 : index
    %0 = vector.load %arg1[%c0, %c0_0, %c0_1] : memref<1x8x128xf32, #tpu.memory_space<vmem>>, vector<1x8x128xf32>
    %1 = vector.shape_cast %0 : vector<1x8x128xf32> to vector<8x128xf32>
    %c0_2 = arith.constant 0 : index
    %c0_3 = arith.constant 0 : index
    %c0_4 = arith.constant 0 : index
    %2 = vector.load %arg2[%c0_2, %c0_3, %c0_4] : memref<1x1x8xf32, #tpu.memory_space<vmem>>, vector<1x1x8xf32>
    %c0_5 = arith.constant 0 : index
    %c0_6 = arith.constant 0 : index
    %3 = vector.load %arg3[%c0_5, %c0_6] : memref<128x384xf32, #tpu.memory_space<vmem>>, vector<128x384xf32>
    %cst = arith.constant dense<0.000000e+00> : vector<8x384xf32>
    %4 = tpu.matmul %1, %3, %cst {dimension_numbers = #tpu.dot_dimension_numbers<[1], [0], [0], [1], [0, 0, 1, 1], [], []>} : vector<8x128xf32>, vector<128x384xf32>, vector<8x384xf32> -> vector<8x384xf32>
    %c0_7 = arith.constant 0 : index
    %c0_8 = arith.constant 0 : index
    %5 = vector.load %arg4[%c0_7, %c0_8] : memref<1x384xf32, #tpu.memory_space<vmem>>, vector<1x384xf32>
    %6 = vector.broadcast %5 : vector<1x384xf32> to vector<8x384xf32>
    %7 = arith.addf %4, %6 : vector<8x384xf32>
    %8 = tpu.transpose %7, [1, 0] : vector<8x384xf32> -> vector<384x8xf32>
    %9 = vector.extract_strided_slice %8 {offsets = [0, 0], sizes = [128, 8], strides = [1, 1]} : vector<384x8xf32> to vector<128x8xf32>
    %10 = vector.shape_cast %9 : vector<128x8xf32> to vector<4x32x8xf32>
    %11 = tpu.transpose %10, [0, 2, 1] : vector<4x32x8xf32> -> vector<4x8x32xf32>
    %12 = vector.extract_strided_slice %8 {offsets = [128, 0], sizes = [128, 8], strides = [1, 1]} : vector<384x8xf32> to vector<128x8xf32>
    %13 = vector.shape_cast %12 : vector<128x8xf32> to vector<4x32x8xf32>
    %14 = tpu.transpose %13, [0, 2, 1] : vector<4x32x8xf32> -> vector<4x8x32xf32>
    %15 = vector.extract_strided_slice %8 {offsets = [256, 0], sizes = [128, 8], strides = [1, 1]} : vector<384x8xf32> to vector<128x8xf32>
    %16 = vector.shape_cast %15 : vector<128x8xf32> to vector<4x32x8xf32>
    %17 = tpu.transpose %16, [0, 2, 1] : vector<4x32x8xf32> -> vector<4x8x32xf32>
    "tpu.trace_start"() <{level = 10 : i32, message = "hqd,hkd->hqk"}> : () -> ()
    %cst_9 = arith.constant dense<0.000000e+00> : vector<4x8x8xf32>
    %18 = tpu.matmul %11, %14, %cst_9 {dimension_numbers = #tpu.dot_dimension_numbers<[2], [2], [1], [1], [0, 0, 0, 1, 1, 1], [0], [0]>} : vector<4x8x32xf32>, vector<4x8x32xf32>, vector<4x8x8xf32> -> vector<4x8x8xf32>
    "tpu.trace_stop"() : () -> ()
    %19 = vector.broadcast %2 : vector<1x1x8xf32> to vector<4x8x8xf32>
    %20 = arith.addf %18, %19 : vector<4x8x8xf32>
    %cst_10 = arith.constant dense<0xFF800000> : vector<4x8xf32>
    %21 = vector.multi_reduction <maximumf>, %20, %cst_10 [2] : vector<4x8x8xf32> to vector<4x8xf32>
    %22 = vector.shape_cast %21 : vector<4x8xf32> to vector<4x8x1xf32>
    %23 = vector.broadcast %22 : vector<4x8x1xf32> to vector<4x8x8xf32>
    %24 = arith.subf %20, %23 : vector<4x8x8xf32>
    %25 = math.exp %24 : vector<4x8x8xf32>
    %cst_11 = arith.constant dense<0.000000e+00> : vector<4x8xf32>
    %26 = vector.multi_reduction <add>, %25, %cst_11 [2] : vector<4x8x8xf32> to vector<4x8xf32>
    %27 = vector.shape_cast %26 : vector<4x8xf32> to vector<4x8x1xf32>
    "tpu.trace_start"() <{level = 10 : i32, message = "hqk,hkd->hqd"}> : () -> ()
    %cst_12 = arith.constant dense<0.000000e+00> : vector<4x8x32xf32>
    %28 = tpu.matmul %25, %17, %cst_12 {dimension_numbers = #tpu.dot_dimension_numbers<[2], [1], [1], [2], [0, 0, 0, 1, 1, 2], [0], [0]>} : vector<4x8x8xf32>, vector<4x8x32xf32>, vector<4x8x32xf32> -> vector<4x8x32xf32>
    "tpu.trace_stop"() : () -> ()
    %29 = tpu.reciprocal %27 {approx = true} : vector<4x8x1xf32> -> vector<4x8x1xf32>
    %30 = vector.broadcast %29 : vector<4x8x1xf32> to vector<4x8x32xf32>
    %31 = arith.mulf %28, %30 : vector<4x8x32xf32>
    %32 = tpu.transpose %31, [0, 2, 1] : vector<4x8x32xf32> -> vector<4x32x8xf32>
    %33 = vector.shape_cast %32 : vector<4x32x8xf32> to vector<128x8xf32>
    %34 = tpu.transpose %33, [1, 0] : vector<128x8xf32> -> vector<8x128xf32>
    %c0_13 = arith.constant 0 : index
    %c0_14 = arith.constant 0 : index
    %35 = vector.load %arg5[%c0_13, %c0_14] : memref<128x128xf32, #tpu.memory_space<vmem>>, vector<128x128xf32>
    %cst_15 = arith.constant dense<0.000000e+00> : vector<8x128xf32>
    %36 = tpu.matmul %34, %35, %cst_15 {dimension_numbers = #tpu.dot_dimension_numbers<[1], [0], [0], [1], [0, 0, 1, 1], [], []>} : vector<8x128xf32>, vector<128x128xf32>, vector<8x128xf32> -> vector<8x128xf32>
    %c0_16 = arith.constant 0 : index
    %c0_17 = arith.constant 0 : index
    %37 = vector.load %arg6[%c0_16, %c0_17] : memref<1x128xf32, #tpu.memory_space<vmem>>, vector<1x128xf32>
    %38 = vector.broadcast %37 : vector<1x128xf32> to vector<8x128xf32>
    %39 = arith.addf %36, %38 : vector<8x128xf32>
    %40 = arith.addf %39, %1 : vector<8x128xf32>
    %cst_18 = arith.constant dense<0.000000e+00> : vector<8xf32>
    %41 = vector.multi_reduction <add>, %40, %cst_18 [1] : vector<8x128xf32> to vector<8xf32>
    %42 = vector.shape_cast %41 : vector<8xf32> to vector<8x1xf32>
    %cst_19 = arith.constant 7.812500e-03 : f32
    %43 = vector.broadcast %cst_19 : f32 to vector<8x1xf32>
    %44 = arith.mulf %42, %43 : vector<8x1xf32>
    %45 = arith.mulf %40, %40 : vector<8x128xf32>
    %cst_20 = arith.constant dense<0.000000e+00> : vector<8xf32>
    %46 = vector.multi_reduction <add>, %45, %cst_20 [1] : vector<8x128xf32> to vector<8xf32>
    %47 = vector.shape_cast %46 : vector<8xf32> to vector<8x1xf32>
    %cst_21 = arith.constant 7.812500e-03 : f32
    %48 = vector.broadcast %cst_21 : f32 to vector<8x1xf32>
    %49 = arith.mulf %47, %48 : vector<8x1xf32>
    %50 = arith.mulf %44, %44 : vector<8x1xf32>
    %51 = arith.subf %49, %50 : vector<8x1xf32>
    %cst_22 = arith.constant 0.000000e+00 : f32
    %52 = vector.broadcast %cst_22 : f32 to vector<8x1xf32>
    %53 = arith.maximumf %51, %52 : vector<8x1xf32>
    %54 = vector.broadcast %44 : vector<8x1xf32> to vector<8x128xf32>
    %55 = arith.subf %40, %54 : vector<8x128xf32>
    %cst_23 = arith.constant 9.99999996E-13 : f32
    %56 = vector.broadcast %cst_23 : f32 to vector<8x1xf32>
    %57 = arith.addf %53, %56 : vector<8x1xf32>
    %58 = math.rsqrt %57 : vector<8x1xf32>
    %59 = vector.broadcast %58 : vector<8x1xf32> to vector<8x128xf32>
    %60 = arith.mulf %55, %59 : vector<8x128xf32>
    %c0_24 = arith.constant 0 : index
    %c0_25 = arith.constant 0 : index
    %61 = vector.load %arg7[%c0_24, %c0_25] : memref<1x128xf32, #tpu.memory_space<vmem>>, vector<1x128xf32>
    %62 = vector.broadcast %61 : vector<1x128xf32> to vector<8x128xf32>
    %63 = arith.mulf %60, %62 : vector<8x128xf32>
    %c0_26 = arith.constant 0 : index
    %c0_27 = arith.constant 0 : index
    %64 = vector.load %arg8[%c0_26, %c0_27] : memref<1x128xf32, #tpu.memory_space<vmem>>, vector<1x128xf32>
    %65 = vector.broadcast %64 : vector<1x128xf32> to vector<8x128xf32>
    %66 = arith.addf %63, %65 : vector<8x128xf32>
    %c0_28 = arith.constant 0 : index
    %c0_29 = arith.constant 0 : index
    %c0_30 = arith.constant 0 : index
    %67 = vector.load %arg9[%c0_28, %c0_29, %c0_30] : memref<1x8x128xf32, #tpu.memory_space<vmem>>, vector<1x8x128xf32>
    %68 = vector.shape_cast %67 : vector<1x8x128xf32> to vector<8x128xf32>
    %69 = vector.shape_cast %66 : vector<8x128xf32> to vector<1x8x128xf32>
    tpu.vector_store %arg9[%c0_28, %c0_29, %c0_30], %69 {strides = array<i32>} : memref<1x8x128xf32, #tpu.memory_space<vmem>>, vector<1x8x128xf32>,
    return
  }
  func.func @transform_0(%arg0: i32) -> (i32, i32, i32) {
    %c0_i32 = arith.constant 0 : i32
    %c0_i32_0 = arith.constant 0 : i32
    %c0_i32_1 = arith.constant 0 : i32
    return %arg0, %c0_i32, %c0_i32_0 : i32, i32, i32
  }
  func.func @transform_1(%arg0: i32) -> (i32, i32, i32) {
    %c0_i32 = arith.constant 0 : i32
    %c0_i32_0 = arith.constant 0 : i32
    %c0_i32_1 = arith.constant 0 : i32
    return %arg0, %c0_i32, %c0_i32_0 : i32, i32, i32
  }
  func.func @transform_2(%arg0: i32) -> (i32, i32) {
    %c0_i32 = arith.constant 0 : i32
    %c0_i32_0 = arith.constant 0 : i32
    %c0_i32_1 = arith.constant 0 : i32
    return %c0_i32, %c0_i32_0 : i32, i32
  }
  func.func @transform_3(%arg0: i32) -> (i32, i32) {
    %c0_i32 = arith.constant 0 : i32
    %c0_i32_0 = arith.constant 0 : i32
    %c0_i32_1 = arith.constant 0 : i32
    return %c0_i32, %c0_i32_0 : i32, i32
  }
  func.func @transform_4(%arg0: i32) -> (i32, i32) {
    %c0_i32 = arith.constant 0 : i32
    %c0_i32_0 = arith.constant 0 : i32
    %c0_i32_1 = arith.constant 0 : i32
    return %c0_i32, %c0_i32_0 : i32, i32
  }
  func.func @transform_5(%arg0: i32) -> (i32, i32) {
    %c0_i32 = arith.constant 0 : i32
    %c0_i32_0 = arith.constant 0 : i32
    %c0_i32_1 = arith.constant 0 : i32
    return %c0_i32, %c0_i32_0 : i32, i32
  }
  func.func @transform_6(%arg0: i32) -> (i32, i32) {
    %c0_i32 = arith.constant 0 : i32
    %c0_i32_0 = arith.constant 0 : i32
    %c0_i32_1 = arith.constant 0 : i32
    return %c0_i32, %c0_i32_0 : i32, i32
  }
  func.func @transform_7(%arg0: i32) -> (i32, i32) {
    %c0_i32 = arith.constant 0 : i32
    %c0_i32_0 = arith.constant 0 : i32
    %c0_i32_1 = arith.constant 0 : i32
    return %c0_i32, %c0_i32_0 : i32, i32
  }
  func.func @transform_8(%arg0: i32) -> (i32, i32, i32) {
    %c0_i32 = arith.constant 0 : i32
    %c0_i32_0 = arith.constant 0 : i32
    %c0_i32_1 = arith.constant 0 : i32
    return %arg0, %c0_i32, %c0_i32_0 : i32, i32, i32
  }
}

</mosaic_0001>

<bundles_post_ra>
// kernel: tpu_custom_call.1
= control target key start
LH: loop header
LB: loop body
LE: loop exit
PB: predicated region body
PF: predicated region fallthrough
CT: control target
= control target key end

     0   :  { %s2889_s0 = inlined_call_operand.hbm [shape: f32[2,8,128], index: 0, kind: input, shape index: {}]   ;;  %s2890_s1 = inlined_call_operand.hbm [shape: f32[2,1,8], index: 1, kind: input, shape index: {}]   ;;  %s2891_s2 = inlined_call_operand.hbm [shape: f32[128,384], index: 2, kind: input, shape index: {}]   ;;  %s2892_s3 = inlined_call_operand.vmem [shape: f32[1,384], index: 3, kind: input, shape index: {}]   ;;  %s2893_s4 = inlined_call_operand.hbm [shape: f32[128,128], index: 4, kind: input, shape index: {}]   ;;  %s2894_s5 = inlined_call_operand.vmem [shape: f32[1,128], index: 5, kind: input, shape index: {}]   ;;  %s2895_s6 = inlined_call_operand.vmem [shape: f32[1,128], index: 6, kind: input, shape index: {}]   ;;  %s2896_s7 = inlined_call_operand.vmem [shape: f32[1,128], index: 7, kind: input, shape index: {}]   ;;  %s2897_s8 = inlined_call_operand.hbm [shape: f32[2,8,128], index: 8, kind: output, shape index: {}]  }
   0x1   :  { %2903 = sst [smem:[#allocation18_spill]] %s2889_s0 }
   0x2   :  { %2904 = sst [smem:[#allocation19_spill]] %s2891_s2 }
   0x3   :  { %2905 = sst [smem:[#allocation20_spill]] %s2893_s4 }
   0x4   :  { %13 = vsyncpa [#allocation3], 0 }
   0x5   :  { %15 = vsyncpa [#allocation3 + $0x1], 0 }
   0x6   :  { %16 = vsyncpa [#allocation6], 0 }
   0x7   :  { %18 = vsyncpa [#allocation6 + $0x1], 0 }
   0x8   :  { %19 = vsyncpa [#allocation9], 0 }
   0x9   :  { %20 = vsyncpa [#allocation4], 0 }
   0xa   :  { %22 = vsyncpa [#allocation4 + $0x1], 0  ;;  %s2523_s27 = smov 0   ;;  %s2525_s28 = smov 0  }
   0xb   :  { %s2527_s29 = smov 0   ;;  %s2529_s30 = smov 0  }
   0xc LB: > { %2906 = sst [smem:[#allocation16_spill]] %s2461_s29  ;;  %s2544_s9 = sadd.s32 4294967295, %s2465_s30   ;;  %s2465_s30 = sphi %s2529_s30, %s2932_s30   ;;  %s2461_s29 = sphi %s2527_s29, %s2929_s29   ;;  %s2457_s28 = sphi %s2525_s28, %s2931_s28   ;;  %s2453_s27 = sphi %s2523_s27, %s2930_s27  }
   0xd   : > { %s1908_s10 = sadd.s32 4294967294, %s2465_s30   ;;  %p48_p0 = scmp.ne.s32.totalorder %s2457_s28, %s2453_s27 }
   0xe   : > { %p2898_p1 = scmp.eq.s32.totalorder %s2544_s9, 0  ;;  %p230_p3 = scmp.eq.s32.totalorder %s1908_s10, 1 }
   0xf   : > { %p1909_p5 = scmp.ge.s32.totalorder %s2465_s30, 1  ;;  %p237_p7 = scmp.lt.s32.totalorder %s2465_s30, 3 }
  0x10   : > { %p2553_p4 = por %p2898_p1, %p48_p0  ;;  %p2558_p6 = por %p230_p3, %p48_p0 }
  0x11   : > { %p2563_p8 = pnand %p1909_p5, %p237_p7  ;;  %s2467_s14 = smov [#allocation7]  }
  0x12   : > { %s2907_s11 = scalar_select %p2553_p4, 1, 0 }
  0x13   : > { %s2908_s12 = scalar_select %p2558_p6, 1, 0 }
  0x14   : > { %s2909_s13 = scalar_select %p2563_p8, 1, 0 }
  0x15   : > { %s249_s15 = sshll.u32 %s2467_s14, 4  ;;  %p2199_p9 = pneg %p2563_p8  ;;  %s250_s15 = int_to_ptr.vmem [resolvable:$true] %s249_s15 }
  0x16   : > { %s2468_s17 = smov [#allocation8]   ;;  %s2292_s19 = scalar_lea.vmem %s250_s15, 6144 }
  0x17   : > { %p2572_p11 = pnand %p2199_p9, %p2898_p1  ;;  %s265_s18 = sshll.u32 %s2468_s17, 4  ;;  %s266_s18 = int_to_ptr.vmem [resolvable:$true] %s265_s18 }
  0x18   : > { %p2293_p13 = scmp.ne.s32.totalorder %s250_s15, %s2292_s19  ;;  %p2300_p5 = scmp.lt.s32.totalorder %s250_s15, %s250_s15 }
  0x19   : > { %p2283_p12 = pneg %p2572_p11  ;;  %p2301_p7 = scmp.lt.s32.totalorder %s2292_s19, %s2292_s19 }
  0x1b   : > { %p2295_p0 = pnand %p2293_p13, %p2283_p12  ;;  %p2302_p10 = por %p2301_p7, %p2300_p5 }
  0x1d   : > { %p2296_p3 = pneg %p2295_p0 }
  0x1f   : > { %p2303_p9 = pnand %p2302_p10, %p2296_p3 }
  0x21   : > { %2306 = shalt.err (!%p2303_p9)
}
  0x22   : > { %s2469_s20 = smov 384   ;;  %s2470_s21 = smov 24  }
  0x23   : > { %s2911_s2 = sld [smem:[#allocation19_spill]]  ;;  %s2318_s24 = scalar_lea.vmem %s266_s18, 2048 }
  0x24   : > { %p2319_p1 = scmp.ne.s32.totalorder %s266_s18, %s2318_s24  ;;  %p2326_p2 = scmp.lt.s32.totalorder %s266_s18, %s266_s18 }
  0x25   : > { %p2327_p6 = scmp.lt.s32.totalorder %s2318_s24, %s2318_s24 }
  0x26   : > { %p2321_p13 = pnand %p2319_p1, %p2283_p12 }
  0x27   : > { %p2328_p5 = por %p2327_p6, %p2326_p2 }
  0x28   : > { %p2322_p0 = pneg %p2321_p13 }
  0x29   : > { %2202 = dma.hbm_to_vmem [thread:$0]  (!%p2572_p11), %s2911_s2, 6144, %s250_s15, [#allocation6], %s2469_s20, %s2469_s20, %s2470_s21  }
  0x2a   : > { %p2329_p10 = pnand %p2328_p5, %p2322_p0 }
  0x2c   : > { %2332 = shalt.err (!%p2329_p10)
}
  0x2d   : > { %s2471_s25 = smov 128   ;;  %s2472_s26 = smov 8  }
  0x2e   : > { %s2912_s4 = sld [smem:[#allocation20_spill]]  ;;  %s2595_s15 = sadd.s32 1, %s2465_s30  }
  0x2f   : > { %s32_s17 = ssub.s32 %s2465_s30, %s2595_s15  ;;  %s35_s19 = sadd.s32 1, %s2461_s29 }
  0x30   : > { %p33_p1 = scmp.eq.s32.totalorder %s32_s17, 0  ;;  %p42_p2 = scmp.ne.s32.totalorder %s2461_s29, %s2457_s28 }
  0x31   : > { %p43_p6 = scmp.eq.s32.totalorder %s2465_s30, 0  ;;  %p2914_p3 = scmp.eq.s32.totalorder %s2544_s9, 1 }
  0x32   : > { %s2604_s20 = scalar_select %p33_p1, %s2461_s29, %s35_s19  }
  0x33   : > { %p44_p12 = por %p43_p6, %p42_p2  ;;  %p2608_p7 = por %p2914_p3, %p42_p2 }
  0x34   : > { %2205 = dma.hbm_to_vmem [thread:$0]  (!%p2572_p11), %s2912_s4, 2048, %s266_s18, [#allocation9], %s2471_s25, %s2471_s25, %s2472_s26  }
  0x35   : > { %2913 = sst [smem:[#allocation17_spill]] %s2604_s20  ;;  %p2219_p9 = scmp.lt.s32.totalorder %s2465_s30, 2 }
  0x36   : > { %s2915_s21 = scalar_select %p2608_p7, 1, 0 }
  0x37   : > { %s2614_s16 = sand.u32 1, %s2461_s29   ;;  %s1914_s22 = sshll.u32 %s2465_s30, 7 }
  0x38   : > { %s1913_s18 = sshll.u32 %s2614_s16, 3  ;;  %s2916_s0 = sld [smem:[#allocation18_spill]] }
  0x39   : > { %s292_s26 = scalar_lea.vmem [#allocation2], %s1913_s18  ;;  %p2625_p11 = pnand %p2219_p9, %p44_p12 }
  0x3a   : > { %s299_s10 = sshll.u32 %s292_s26, 4  ;;  %s289_s19 = scalar_lea.sflag [#allocation3], %s2614_s16  ;;  %s2623_s10 = int_to_ptr.vmem [resolvable:$true] %s299_s10 }
  0x3b   : > { %p2335_p0 = pneg %p2625_p11 }
  0x3e   : > { %s2621_s25 = scalar_lea.hbm %s2916_s0, %s1914_s22  ;;  %s2338_s23 = scalar_lea.hbm %s2916_s0, 256 }
  0x3f   : > { %s2333_s2 = scalar_lea.hbm %s2621_s25, 128  ;;  %p2339_p1 = scmp.lt.s32.totalorder %s2621_s25, %s2916_s0 }
  0x40   : > { %p2334_p13 = scmp.ne.s32.totalorder %s2621_s25, %s2333_s2  ;;  %p2340_p2 = scmp.lt.s32.totalorder %s2338_s23, %s2333_s2 }
  0x42   : > { %p2336_p5 = pnand %p2335_p0, %p2334_p13  ;;  %p2341_p6 = por %p2340_p2, %p2339_p1 }
  0x44   : > { %p2337_p10 = pneg %p2336_p5 }
  0x46   : > { %p2342_p12 = pnand %p2341_p6, %p2337_p10 }
  0x48   : > { %2345 = shalt.err (!%p2342_p12)
}
  0x49   : > { %s2346_s17 = scalar_lea.vmem %s2623_s10, 128  ;;  %s2473_s18 = smov [#allocation2]  }
  0x4a   : > { %p2347_p3 = scmp.ne.s32.totalorder %s2623_s10, %s2346_s17  ;;  %s2351_s22 = sshll.u32 %s2473_s18, 4  ;;  %s2352_s22 = int_to_ptr.vmem [resolvable:$false] %s2351_s22 }
  0x4b   : > { %s2353_s4 = scalar_lea.vmem %s2352_s22, 256  ;;  %p2354_p5 = scmp.lt.s32.totalorder %s2623_s10, %s2352_s22 }
  0x4c   : > { %p2349_p9 = pnand %p2347_p3, %p2335_p0  ;;  %p2355_p7 = scmp.lt.s32.totalorder %s2353_s4, %s2346_s17 }
  0x4e   : > { %p2350_p13 = pneg %p2349_p9  ;;  %p2356_p4 = por %p2355_p7, %p2354_p5 }
  0x50   : > { %p2357_p1 = pnand %p2356_p4, %p2350_p13 }
  0x52   : > { %2360 = shalt.err (!%p2357_p1)
}
  0x53   : > { %2209 = dma.hbm_to_vmem [thread:$0]  (!%p2625_p11), %s2621_s25, 128, %s2623_s10, %s289_s19  }
  0x54   : > { %s1915_s2 = sshll.u32 %s2465_s30, 4  ;;  %s309_s23 = scalar_lea.vmem [#allocation5], %s2614_s16 }
  0x55   : > { %s316_s24 = sshll.u32 %s309_s23, 4  ;;  %s314_s22 = scalar_lea.hbm %s2890_s1, %s1915_s2  ;;  %s317_s24 = int_to_ptr.vmem [resolvable:$true] %s316_s24 }
  0x56   : > { %s2918_s4 = sand.u32 1, %s2465_s30   ;;  %s2361_s0 = scalar_lea.hbm %s314_s22, 16 }
  0x57   : > { %s307_s17 = scalar_lea.sflag [#allocation6], %s2918_s4  ;;  %p2362_p4 = scmp.ne.s32.totalorder %s314_s22, %s2361_s0 }
  0x58   : > { %s2366_s25 = scalar_lea.hbm %s2890_s1, 32  ;;  %p2367_p2 = scmp.lt.s32.totalorder %s314_s22, %s2890_s1 }
  0x59   : > { %p2364_p7 = pnand %p2362_p4, %p2335_p0  ;;  %p2368_p6 = scmp.lt.s32.totalorder %s2366_s25, %s2361_s0 }
  0x5b   : > { %p2365_p10 = pneg %p2364_p7  ;;  %p2369_p12 = por %p2368_p6, %p2367_p2 }
  0x5d   : > { %p2370_p3 = pnand %p2369_p12, %p2365_p10 }
  0x5f   : > { %2373 = shalt.err (!%p2370_p3)
}
  0x60   : > { %s2374_s19 = scalar_lea.vmem %s317_s24, 16  ;;  %s2474_s2 = smov [#allocation5]  }
  0x61   : > { %p2375_p9 = scmp.ne.s32.totalorder %s317_s24, %s2374_s19  ;;  %s2379_s23 = sshll.u32 %s2474_s2, 4  ;;  %s2380_s23 = int_to_ptr.vmem [resolvable:$false] %s2379_s23 }
  0x62   : > { %s2381_s29 = scalar_lea.vmem %s2380_s23, 32  ;;  %p2382_p1 = scmp.lt.s32.totalorder %s317_s24, %s2380_s23 }
  0x63   : > { %p2377_p13 = pnand %p2375_p9, %p2335_p0  ;;  %p2383_p4 = scmp.lt.s32.totalorder %s2381_s29, %s2374_s19 }
  0x65   : > { %p2378_p5 = pneg %p2377_p13  ;;  %p2384_p7 = por %p2383_p4, %p2382_p1 }
  0x67   : > { %p2385_p8 = pnand %p2384_p7, %p2378_p5 }
  0x69   : > { %2388 = shalt.err (!%p2385_p8)
}
  0x6a   : > { %2212 = dma.hbm_to_vmem [thread:$0]  (!%p2625_p11), %s314_s22, 16, %s317_s24, %s307_s17  }
  0x6b   : > { %p2919_p10 = scmp.ne.s32.totalorder %s2909_s13, 0 }
  0x6c   : > { %s2679_s0 = sand.u32 (!%p2919_p10), 1, %s2457_s28   ;;  %p2920_p0 = scmp.ne.s32.totalorder (!%p2919_p10), %s2907_s11, 0 }
  0x6d   : > { %325 = sbr.rel (%p2919_p10) target bundleno = 1875 (0x753), region = 52  ;;  %s1917_s20 = sshll.u32 (!%p2919_p10), %s2679_s0, 3 }
  0x6e   : > { %s328_s26 = scalar_lea.sflag (!%p2919_p10), [#allocation3], %s2679_s0  ;;  %s2685_s18 = scalar_lea.vmem (!%p2919_p10), [#allocation2], %s1917_s20 }
  0x72   : > { %2432 = dma.done.wait (%p2920_p0), %s328_s26, 128  }
  0x73   : > { %2434 = vsyncadd (%p2920_p0), %s328_s26, 4294967168  ;;  %s336_s13 = sand.u32 1, %s2544_s9   ;;  %s339_s24 = scalar_lea.vmem [#allocation5], %s2679_s0 }
  0x74   : > { %s337_s14 = scalar_lea.sflag [#allocation6], %s336_s13 }
  0x75   : > { %2436 = dma.done.wait (%p2920_p0), %s337_s14, 16  }
  0x76   : > { %2438 = vsyncadd (%p2920_p0), %s337_s14, 4294967280  ;;  %p2921_p8 = scmp.eq.s32.totalorder %s2544_s9, 0 }
  0x78   : > { %2440 = dma.done.wait (%p2921_p8), [#allocation6], 6144   ;;  %p2922_p11 = pmov %p2921_p8 }
  0x79   : > { %p2923_p2 = pmov %p2921_p8 }
  0x7a   : > { %2442 = vsyncadd (%p2922_p11), [#allocation6], 4294961152 }
  0x7b   : > { %2444 = dma.done.wait (%p2923_p2), [#allocation9], 2048   ;;  %p2924_p6 = pmov %p2923_p2 }
  0x7c   : > { %v2475_v0 = vmov 0.0   ;;  %v432_v1 = vld [vmem:[#allocation7 + $0x170] sm:$0xff]  ;;  %v431_v2 = vld [vmem:[#allocation7 + $0x168] sm:$0xff]  ;;  %v429_v3 = vld [vmem:[#allocation7 + $0x158] sm:$0xff]  ;;  %v436_v34 = vlaneseq  ;;  %vm2476_vm0 = vmmov 0   ;;  %vm822_vm1 = vcmask 261120  }
  0x7d   : > { %2446 = vsyncadd (%p2924_p6), [#allocation9], 4294965248  ;;  %515 = vmatprep.mubr.f32.mxu0 %v2475_v0  ;;  %2027 = vmatprep.subr.mxu1 %v2475_v0  ;;  %v428_v4 = vld [vmem:[#allocation7 + $0x150] sm:$0xff]  ;;  %v426_v5 = vld [vmem:[#allocation7 + $0x140] sm:$0xff]  ;;  %vm1115_vm2 = vcmask 64512   ;;  %s1950_s2 = sshll.u32 %s2544_s9, 7 }
  0x7e   : > { %451 = vmatprep.subr.mxu0 %v432_v1  ;;  %v425_v6 = vld [vmem:[#allocation7 + $0x138] sm:$0xff]  ;;  %v423_v7 = vld [vmem:[#allocation7 + $0x128] sm:$0xff]  ;;  %v422_v8 = vld [vmem:[#allocation7 + $0x120] sm:$0xff]  ;;  %v2712_v35 = vshrl.u32 %v436_v34, 7  ;;  %2059 = vmatprep.mubr.msk.f32.mxu1 %vm2476_vm0, %v2475_v0  ;;  %s383_s23 = scalar_lea.vmem [#allocation10], %s1917_s20  ;;  %s1797_s13 = scalar_lea.hbm %s2897_s8, %s1950_s2 }
  0x7f   : > { %452 = vmatpush1.msra.mxu0 %v431_v2  ;;  %v420_v9 = vld [vmem:[#allocation7 + $0x110] sm:$0xff]  ;;  %v419_v10 = vld [vmem:[#allocation7 + $0x108] sm:$0xff]  ;;  %v417_v11 = vld [vmem:[#allocation7 + $0xf8] sm:$0xff]  ;;  %s1799_s29 = sshll.u32 %s383_s23, 4  ;;  %s1786_s14 = scalar_lea.sflag [#allocation4], %s2679_s0  ;;  %s1800_s29 = int_to_ptr.vmem [resolvable:$true] %s1799_s29 }
  0x80   : > { %453 = vmatprep.subr.mxu0 %v429_v3  ;;  %v416_v12 = vld [vmem:[#allocation7 + $0xf0] sm:$0xff]  ;;  %v414_v13 = vld [vmem:[#allocation7 + $0xe0] sm:$0xff]  ;;  %v413_v14 = vld [vmem:[#allocation7 + $0xd8] sm:$0xff]  ;;  %v438_v36 = vsub.s32 0, %v2712_v35  ;;  %v442_v41 = vsub.s32 1, %v2712_v35  ;;  %p2925_p3 = scmp.ne.s32.totalorder %s2915_s21, 0 }
  0x81   : > { %454 = vmatpush1.msra.mxu0 %v428_v4  ;;  %v411_v15 = vld [vmem:[#allocation7 + $0xc8] sm:$0xff]  ;;  %v410_v16 = vld [vmem:[#allocation7 + $0xc0] sm:$0xff]  ;;  %v408_v17 = vld [vmem:[#allocation7 + $0xb0] sm:$0xff]  ;;  %s2477_s11 = smov [#allocation10]  }
  0x82   : > { %455 = vmatprep.subr.mxu0 %v426_v5  ;;  %v407_v18 = vld [vmem:[#allocation7 + $0xa8] sm:$0xff]  ;;  %v405_v19 = vld [vmem:[#allocation7 + $0x98] sm:$0xff]  ;;  %v404_v20 = vld [vmem:[#allocation7 + $0x90] sm:$0xff]  ;;  %s2393_s22 = sshll.u32 %s2477_s11, 4  ;;  %s2394_s22 = int_to_ptr.vmem [resolvable:$false] %s2393_s22 }
  0x83   : > { %456 = vmatpush1.msra.mxu0 %v425_v6  ;;  %v402_v21 = vld [vmem:[#allocation7 + $0x80] sm:$0xff]  ;;  %v401_v22 = vld [vmem:[#allocation7 + $0x78] sm:$0xff]  ;;  %v399_v23 = vld [vmem:[#allocation7 + $0x68] sm:$0xff]  ;;  %s2395_s9 = scalar_lea.vmem %s2394_s22, 256  ;;  %p2396_p5 = scmp.lt.s32.totalorder %s1800_s29, %s2394_s22 }
  0x84   : > { %457 = vmatprep.subr.mxu0 %v423_v7  ;;  %v398_v24 = vld [vmem:[#allocation7 + $0x60] sm:$0xff]  ;;  %v396_v25 = vld [vmem:[#allocation7 + $0x50] sm:$0xff]  ;;  %v395_v26 = vld [vmem:[#allocation7 + $0x48] sm:$0xff] }
  0x85   : > { %458 = vmatpush1.msra.mxu0 %v422_v8  ;;  %v393_v27 = vld [vmem:[#allocation7 + $0x38] sm:$0xff]  ;;  %v392_v28 = vld [vmem:[#allocation7 + $0x30] sm:$0xff]  ;;  %v390_v29 = vld [vmem:[#allocation7 + $0x20] sm:$0xff] }
  0x86   : > { %459 = vmatprep.subr.mxu0 %v420_v9  ;;  %v389_v30 = vld [vmem:[#allocation7 + $0x18] sm:$0xff]  ;;  %v387_v31 = vld [vmem:[#allocation7 + $0x8] sm:$0xff]  ;;  %v386_v32 = vld [vmem:[#allocation7] sm:$0xff] }
  0x87   : > { %460 = vmatpush1.msra.mxu0 %v419_v10  ;;  %v2708_v33 = vld [vmem:[%s2685_s18] sm:$0xff]  ;;  %v430_v45 = vld [vmem:[#allocation7 + $0x160] sm:$0xff] }
  0x88   : > { %461 = vmatprep.subr.mxu0 %v417_v11  ;;  %v2718_v37 = vld [vmem:[%s2892_s3] sm:$0x7]  ;;  %v433_v44 = vld [vmem:[#allocation7 + $0x178] sm:$0xff]  ;;  %v418_v50 = vld [vmem:[#allocation7 + $0x100] sm:$0xff] }
  0x89   : > { %462 = vmatpush1.msra.mxu0 %v416_v12  ;;  %v439_v38 = vrot.slane %v2718_v37, %v438_v36  ;;  %v443_v42 = vrot.slane %v2718_v37, %v442_v41  ;;  %2028 = vmatpush3.msra.mxu1 %v433_v44  ;;  %v427_v47 = vld [vmem:[#allocation7 + $0x148] sm:$0xff]  ;;  %v424_v48 = vld [vmem:[#allocation7 + $0x130] sm:$0xff]  ;;  %v421_v49 = vld [vmem:[#allocation7 + $0x118] sm:$0xff] }
  0x8a   : > { %463 = vmatprep.subr.mxu0 %v414_v13  ;;  %2029 = vmatprep.subr.mxu1 %v2475_v0  ;;  %v415_v51 = vld [vmem:[#allocation7 + $0xe8] sm:$0xff]  ;;  %v412_v52 = vld [vmem:[#allocation7 + $0xd0] sm:$0xff]  ;;  %v409_v53 = vld [vmem:[#allocation7 + $0xb8] sm:$0xff] }
  0x8b   : > { %464 = vmatpush1.msra.mxu0 %v413_v14  ;;  %2030 = vmatpush3.msra.mxu1 %v430_v45  ;;  %v406_v54 = vld [vmem:[#allocation7 + $0xa0] sm:$0xff]  ;;  %v403_v55 = vld [vmem:[#allocation7 + $0x88] sm:$0xff]  ;;  %v400_v56 = vld [vmem:[#allocation7 + $0x70] sm:$0xff] }
  0x8c   : > { %465 = vmatprep.subr.mxu0 %v411_v15  ;;  %2031 = vmatprep.subr.mxu1 %v2475_v0  ;;  %v397_v57 = vld [vmem:[#allocation7 + $0x58] sm:$0xff]  ;;  %v394_v58 = vld [vmem:[#allocation7 + $0x40] sm:$0xff]  ;;  %v391_v59 = vld [vmem:[#allocation7 + $0x28] sm:$0xff] }
  0x8d   : > { %466 = vmatpush1.msra.mxu0 %v410_v16  ;;  %2032 = vmatpush3.msra.mxu1 %v427_v47  ;;  %v388_v60 = vld [vmem:[#allocation7 + $0x10] sm:$0xff] }
  0x8e   : > { %467 = vmatprep.subr.mxu0 %v408_v17  ;;  %2033 = vmatprep.subr.mxu1 %v2475_v0 }
  0x8f   : > { %468 = vmatpush1.msra.mxu0 %v407_v18  ;;  %2034 = vmatpush3.msra.mxu1 %v424_v48 }
  0x90   : > { %469 = vmatprep.subr.mxu0 %v405_v19  ;;  %2035 = vmatprep.subr.mxu1 %v2475_v0 }
  0x91   : > { %470 = vmatpush1.msra.mxu0 %v404_v20  ;;  %2036 = vmatpush3.msra.mxu1 %v421_v49 }
  0x92   : > { %471 = vmatprep.subr.mxu0 %v402_v21  ;;  %2037 = vmatprep.subr.mxu1 %v2475_v0 }
  0x93   : > { %472 = vmatpush1.msra.mxu0 %v401_v22  ;;  %2038 = vmatpush3.msra.mxu1 %v418_v50 }
  0x94   : > { %473 = vmatprep.subr.mxu0 %v399_v23  ;;  %2039 = vmatprep.subr.mxu1 %v2475_v0 }
  0x95   : > { %474 = vmatpush1.msra.mxu0 %v398_v24  ;;  %2040 = vmatpush3.msra.mxu1 %v415_v51 }
  0x96   : > { %475 = vmatprep.subr.mxu0 %v396_v25  ;;  %2041 = vmatprep.subr.mxu1 %v2475_v0 }
  0x97   : > { %476 = vmatpush1.msra.mxu0 %v395_v26  ;;  %2042 = vmatpush3.msra.mxu1 %v412_v52 }
  0x98   : > { %477 = vmatprep.subr.mxu0 %v393_v27  ;;  %2043 = vmatprep.subr.mxu1 %v2475_v0 }
  0x99   : > { %478 = vmatpush1.msra.mxu0 %v392_v28  ;;  %2044 = vmatpush3.msra.mxu1 %v409_v53 }
  0x9a   : > { %479 = vmatprep.subr.mxu0 %v390_v29  ;;  %2045 = vmatprep.subr.mxu1 %v2475_v0 }
  0x9b   : > { %480 = vmatpush1.msra.mxu0 %v389_v30  ;;  %2046 = vmatpush3.msra.mxu1 %v406_v54 }
  0x9c   : > { %481 = vmatprep.subr.mxu0 %v387_v31  ;;  %2047 = vmatprep.subr.mxu1 %v2475_v0 }
  0x9d   : > { %482 = vmatpush1.msra.mxu0 %v386_v32  ;;  %2048 = vmatpush3.msra.mxu1 %v403_v55 }
  0x9e   : > { %516 = vmatmul.mubr.f32.vlgmr.msra.gmra.mxu0 %v2708_v33  ;;  %2062 = vmatprep.subr.mxu0 %v2475_v0 }
  0x9f   : > { %2049 = vmatprep.subr.mxu1 %v2475_v0  ;;  %2070 = vmatprep.mubr.msk.f32.mxu0 %vm2476_vm0, %v2475_v0 }
  0xa0   : > { %2050 = vmatpush3.msra.mxu1 %v400_v56  ;;  %v446_v56 = vsub.s32 2, %v2712_v35 }
  0xa1   : > { %2051 = vmatprep.subr.mxu1 %v2475_v0 }
  0xa2   : > { %2052 = vmatpush3.msra.mxu1 %v397_v57  ;;  %v447_v57 = vrot.slane %v2718_v37, %v446_v56  ;;  %v1672_v56 = vld [vmem:[#allocation8 + $0x60] sm:$0xff] }
  0xa3   : > { %2053 = vmatprep.subr.mxu1 %v2475_v0 }
  0xa4   : > { %2054 = vmatpush3.msra.mxu1 %v394_v58 }
  0xa5   : > { %2055 = vmatprep.subr.mxu1 %v2475_v0 }
  0xa6   : > { %2056 = vmatpush3.msra.mxu1 %v391_v59 }
  0xa7   : > { %2057 = vmatprep.subr.mxu1 %v2475_v0 }
  0xa8   : > { %2058 = vmatpush3.msra.mxu1 %v388_v60 }
  0xa9   : > { %2073 = vmatprep.subr.mxu1 %v2475_v0  ;;  %2060 = vmatmul.mubr.f32.vlgmr.msra.gmra.mxu1 %v2708_v33 }
  0xaa   : > { %2081 = vmatprep.mubr.msk.f32.mxu1 %vm2476_vm0, %v2475_v0 }
 0x15e   : > { %v517_v39 = vpop.f32.mrf.mxu0 }
 0x15f   : > { %v518_v40 = vadd.f32 %v517_v39, %v439_v38  ;;  %v1921_v39 = vld [vmem:[%s339_s24] ss:$0 sm:$0xff]  ;;  %s2389_s24 = scalar_lea.vmem %s1800_s29, 128 }
 0x160   : > { %v519_v43 = vpop.f32.mrf.mxu0  ;;  %p2390_p12 = scmp.ne.s32.totalorder %s1800_s29, %s2389_s24  ;;  %p2397_p1 = scmp.lt.s32.totalorder %s2395_s9, %s2389_s24 }
 0x161   : > { %592 = vxpose.xlu0.b32.start.end [1/1] (short) %v518_v40, 128  ;;  %v520_v46 = vadd.f32 %v519_v43, %v443_v42 }
 0x162   : > { %p2391_p9 = pnand %p2390_p12, %p2925_p3  ;;  %p2398_p4 = por %p2397_p1, %p2396_p5 }
 0x164   : > { %p2392_p13 = pneg %p2391_p9 }
 0x166   : > { %p2399_p7 = pnand %p2398_p4, %p2392_p13 }
 0x169   : > { %v588_v36 = vpop.f32.mrf.mxu1 }
 0x16a   : > { %v589_v58 = vadd.f32 %v588_v36, %v447_v57  ;;  %v1671_v57 = vld [vmem:[#allocation8 + $0x58] sm:$0xff] }
 0x16b   : > { %v2061_v38 = vpop.f32.mrf.mxu1 }
 0x19e   : > { %624 = vxpose.xlu0.b32.start.end [1/1] (short) %v520_v46, 128 }
 0x1dd   : > { %v608_v61 = vpop.trf.xlu0 }
 0x1de   : > { %688 = vxpose.xlu1.b32.start [1/4] (short) (narrow) %v608_v61, 8 }
 0x1e1   : > { %v609_v62 = vpop.trf.xlu0 }
 0x1e2   : > { %689 = vxpose.xlu1.b32.cont [2/4] (short) (narrow) %v609_v62, 8 }
 0x1e5   : > { %v610_v63 = vpop.trf.xlu0 }
 0x1e6   : > { %690 = vxpose.xlu1.b32.cont [3/4] (short) (narrow) %v610_v63, 8 }
 0x1e9   : > { %v611_v1 = vpop.trf.xlu0 }
 0x1ea   : > { %691 = vxpose.xlu1.b32.end [4/4] (short) (narrow) %v611_v1, 8 }
 0x1ed   : > { %v612_v2 = vpop.trf.xlu0 }
 0x1ee   : > { %720 = vxpose.xlu1.b32.start [1/4] (short) (narrow) %v612_v2, 8 }
 0x1f1   : > { %v613_v3 = vpop.trf.xlu0 }
 0x1f2   : > { %721 = vxpose.xlu1.b32.cont [2/4] (short) (narrow) %v613_v3, 8 }
 0x1f5   : > { %v614_v4 = vpop.trf.xlu0 }
 0x1f6   : > { %722 = vxpose.xlu1.b32.cont [3/4] (short) (narrow) %v614_v4, 8 }
 0x1f9   : > { %v615_v5 = vpop.trf.xlu0 }
 0x1fa   : > { %723 = vxpose.xlu1.b32.end [4/4] (short) (narrow) %v615_v5, 8 }
 0x1fd   : > { %v616_v6 = vpop.trf.xlu0 }
 0x1fe   : > { %752 = vxpose.xlu1.b32.start [1/4] (short) (narrow) %v616_v6, 8 }
 0x201   : > { %v617_v7 = vpop.trf.xlu0 }
 0x202   : > { %753 = vxpose.xlu1.b32.cont [2/4] (short) (narrow) %v617_v7, 8 }
 0x205   : > { %v618_v8 = vpop.trf.xlu0 }
 0x206   : > { %754 = vxpose.xlu1.b32.cont [3/4] (short) (narrow) %v618_v8, 8 }
 0x209   : > { %v619_v9 = vpop.trf.xlu0 }
 0x20a   : > { %755 = vxpose.xlu1.b32.end [4/4] (short) (narrow) %v619_v9, 8 }
 0x20d   : > { %v620_v10 = vpop.trf.xlu0 }
 0x20e   : > { %784 = vxpose.xlu1.b32.start [1/4] (short) (narrow) %v620_v10, 8 }
 0x211   : > { %v621_v11 = vpop.trf.xlu0 }
 0x212   : > { %785 = vxpose.xlu1.b32.cont [2/4] (short) (narrow) %v621_v11, 8 }
 0x215   : > { %v622_v12 = vpop.trf.xlu0 }
 0x216   : > { %786 = vxpose.xlu1.b32.cont [3/4] (short) (narrow) %v622_v12, 8 }
 0x219   : > { %v623_v13 = vpop.trf.xlu0 }
 0x21a   : > { %787 = vxpose.xlu1.b32.end [4/4] (short) (narrow) %v623_v13, 8 }
 0x21d   : > { %v640_v14 = vpop.trf.xlu0 }
 0x221   : > { %v641_v15 = vpop.trf.xlu0 }
 0x225   : > { %v642_v16 = vpop.trf.xlu0 }
 0x229   : > { %v643_v17 = vpop.trf.xlu0 }
 0x22a   : > { %2063 = vmatpush3.msra.mxu0 %v643_v17 }
 0x22b   : > { %2064 = vmatprep.subr.mxu0 %v2475_v0 }
 0x22c   : > { %2065 = vmatpush3.msra.mxu0 %v642_v16 }
 0x22d   : > { %2066 = vmatprep.subr.mxu0 %v2475_v0  ;;  %v644_v18 = vpop.trf.xlu0 }
 0x22e   : > { %2067 = vmatpush3.msra.mxu0 %v641_v15 }
 0x22f   : > { %2068 = vmatprep.subr.mxu0 %v2475_v0 }
 0x230   : > { %2069 = vmatpush3.msra.mxu0 %v640_v14 }
 0x231   : > { %v645_v19 = vpop.trf.xlu0  ;;  %2084 = vmatprep.subr.mxu0 %v2475_v0 }
 0x235   : > { %v646_v20 = vpop.trf.xlu0 }
 0x239   : > { %v647_v21 = vpop.trf.xlu0 }
 0x23a   : > { %2074 = vmatpush3.msra.mxu1 %v647_v21 }
 0x23b   : > { %2075 = vmatprep.subr.mxu1 %v2475_v0 }
 0x23c   : > { %2076 = vmatpush3.msra.mxu1 %v646_v20 }
 0x23d   : > { %2077 = vmatprep.subr.mxu1 %v2475_v0  ;;  %v648_v22 = vpop.trf.xlu0 }
 0x23e   : > { %2078 = vmatpush3.msra.mxu1 %v645_v19 }
 0x23f   : > { %2079 = vmatprep.subr.mxu1 %v2475_v0 }
 0x240   : > { %2080 = vmatpush3.msra.mxu1 %v644_v18 }
 0x241   : > { %2095 = vmatprep.subr.mxu1 %v2475_v0  ;;  %v649_v23 = vpop.trf.xlu0 }
 0x245   : > { %v650_v24 = vpop.trf.xlu0 }
 0x249   : > { %v651_v25 = vpop.trf.xlu0 }
 0x24d   : > { %v652_v26 = vpop.trf.xlu0 }
 0x251   : > { %v653_v28 = vpop.trf.xlu0 }
 0x255   : > { %v654_v29 = vpop.trf.xlu0 }
 0x259   : > { %v655_v30 = vpop.trf.xlu0 }
 0x25a   : > { %v704_v27 = vpop.trf.xlu1 }
 0x25b   : > { %2071 = vmatmul.mubr.msk.f32.vlgmr.msra.gmra.mxu0 %vm822_vm1, %v704_v27 }
 0x25c   : > { %2085 = vmatpush3.msra.mxu0 %v651_v25  ;;  %2092 = vmatprep.mubr.msk.f32.mxu0 %vm2476_vm0, %v2475_v0 }
 0x25d   : > { %2086 = vmatprep.subr.mxu0 %v2475_v0 }
 0x25e   : > { %2087 = vmatpush3.msra.mxu0 %v650_v24 }
 0x25f   : > { %2088 = vmatprep.subr.mxu0 %v2475_v0 }
 0x260   : > { %2089 = vmatpush3.msra.mxu0 %v649_v23 }
 0x261   : > { %2090 = vmatprep.subr.mxu0 %v2475_v0 }
 0x262   : > { %2091 = vmatpush3.msra.mxu0 %v648_v22 }
 0x263   : > { %2128 = vmatprep.subr.mxu0 %v2475_v0 }
 0x26a   : > { %v736_v31 = vpop.trf.xlu1 }
 0x26b   : > { %2082 = vmatmul.mubr.msk.f32.vlgmr.msra.gmra.mxu1 %vm822_vm1, %v736_v31 }
 0x26c   : > { %2096 = vmatpush3.msra.mxu1 %v655_v30  ;;  %2103 = vmatprep.mubr.msk.f32.mxu1 %vm2476_vm0, %v2475_v0 }
 0x26d   : > { %2097 = vmatprep.subr.mxu1 %v2475_v0 }
 0x26e   : > { %2098 = vmatpush3.msra.mxu1 %v654_v29 }
 0x26f   : > { %2099 = vmatprep.subr.mxu1 %v2475_v0 }
 0x270   : > { %2100 = vmatpush3.msra.mxu1 %v653_v28 }
 0x271   : > { %2101 = vmatprep.subr.mxu1 %v2475_v0 }
 0x272   : > { %2102 = vmatpush3.msra.mxu1 %v652_v26 }
 0x273   : > { %2106 = vmatprep.subr.mxu1 %v2475_v0 }
 0x27a   : > { %v768_v32 = vpop.trf.xlu1 }
 0x27b   : > { %2093 = vmatmul.mubr.msk.f32.vlgmr.msra.gmra.mxu0 %vm822_vm1, %v768_v32 }
 0x27c   : > { %2136 = vmatprep.mubr.msk.f32.mxu0 %vm2476_vm0, %v2475_v0 }
 0x28a   : > { %v800_v34 = vpop.trf.xlu1 }
 0x28b   : > { %2104 = vmatmul.mubr.msk.f32.vlgmr.msra.gmra.mxu1 %vm822_vm1, %v800_v34 }
 0x28c   : > { %2114 = vmatprep.mubr.msk.f32.mxu1 %vm2476_vm0, %v2475_v0 }
 0x31b   : > { %v892_v40 = vpop.f32.mrf.mxu0 }
 0x31c   : > { %v893_v41 = vadd.f32 %v1921_v39, %v892_v40 }
 0x31d   : > { %v2072_v42 = vpop.f32.mrf.mxu0 }
 0x31e   : > { %v1116_v43 = vsel %vm1115_vm2, %v893_v41, -inf }
 0x31f   : > { %1117 = vmax.xlane.f32.xlu1 %v1116_v43 }
 0x32b   : > { %v965_v44 = vpop.f32.mrf.mxu1 }
 0x32c   : > { %v966_v45 = vadd.f32 %v1921_v39, %v965_v44 }
 0x32d   : > { %v2083_v46 = vpop.f32.mrf.mxu1 }
 0x32e   : > { %v1119_v47 = vsel %vm1115_vm2, %v966_v45, -inf }
 0x32f   : > { %1120 = vmax.xlane.f32.xlu0 %v1119_v47 }
 0x33b   : > { %v1038_v48 = vpop.f32.mrf.mxu0 }
 0x33c   : > { %v1039_v49 = vadd.f32 %v1921_v39, %v1038_v48 }
 0x33d   : > { %v2094_v50 = vpop.f32.mrf.mxu0 }
 0x33e   : > { %v1122_v51 = vsel %vm1115_vm2, %v1039_v49, -inf }
 0x33f   : > { %1123 = vmax.xlane.f32.xlu1 %v1122_v51 }
 0x34b   : > { %v1111_v52 = vpop.f32.mrf.mxu1 }
 0x34c   : > { %v1112_v53 = vadd.f32 %v1921_v39, %v1111_v52 }
 0x34d   : > { %v2105_v54 = vpop.f32.mrf.mxu1 }
 0x34e   : > { %v1125_v55 = vsel %vm1115_vm2, %v1112_v53, -inf  ;;  %v1674_v54 = vld [vmem:[#allocation8 + $0x70] sm:$0xff] }
 0x34f   : > { %1126 = vmax.xlane.f32.xlu1 %v1125_v55  ;;  %v1673_v55 = vld [vmem:[#allocation8 + $0x68] sm:$0xff] }
 0x382   : > { %656 = vxpose.xlu1.b32.start.end [1/1] (short) %v589_v58, 128  ;;  %v1670_v58 = vld [vmem:[#allocation8 + $0x50] sm:$0xff] }
 0x3a8   : > { %v1118_v62 = vpop.xlane.xlu1 %1117 }
 0x3a9   : > { %v1128_v5 = vsub.f32 %v893_v41, %v1118_v62  ;;  %v1666_v62 = vld [vmem:[#allocation8 + $0x30] sm:$0xff] }
 0x3ab   : > { %v1132_v6 = vmul.f32 1.442695, %v1128_v5  ;;  %v1660_v5 = vld [vmem:[#allocation8] sm:$0xff] }
 0x3b8   : > { %v1121_v59 = vpop.xlane.xlu0 %1120 }
 0x3b9   : > { %v1129_v60 = vsub.f32 %v966_v45, %v1121_v59  ;;  %v1669_v59 = vld [vmem:[#allocation8 + $0x48] sm:$0xff] }
 0x3bb   : > { %v1134_v61 = vmul.f32 1.442695, %v1129_v60  ;;  %v1668_v60 = vld [vmem:[#allocation8 + $0x40] sm:$0xff] }
 0x3bd   : > { %2263 = vpow2.f32 %v1134_v61  ;;  %v1667_v61 = vld [vmem:[#allocation8 + $0x38] sm:$0xff] }
 0x3c8   : > { %v1124_v63 = vpop.xlane.xlu1 %1123 }
 0x3c9   : > { %v1130_v1 = vsub.f32 %v1039_v49, %v1124_v63  ;;  %v1665_v63 = vld [vmem:[#allocation8 + $0x28] sm:$0xff] }
 0x3ca   : > { %v2264_v2 = vpop.eup %2263 }
 0x3cb   : > { %v1136_v3 = vmul.f32 1.442695, %v1130_v1  ;;  %v1143_v4 = vsel %vm1115_vm2, %v2264_v2, 0.0  ;;  %v1664_v1 = vld [vmem:[#allocation8 + $0x20] sm:$0xff] }
 0x3cc   : > { %1144 = vadd.xlane.f32.xlu0 %v1143_v4  ;;  %v1661_v4 = vld [vmem:[#allocation8 + $0x8] sm:$0xff] }
 0x3cd   : > { %2265 = vpow2.f32 %v1136_v3  ;;  %v1662_v3 = vld [vmem:[#allocation8 + $0x10] sm:$0xff] }
 0x3ce   : > { %2267 = vpow2.f32 %v1132_v6 }
 0x3d8   : > { %v1127_v35 = vpop.xlane.xlu1 %1126 }
 0x3d9   : > { %v1131_v37 = vsub.f32 %v1112_v53, %v1127_v35  ;;  %v1675_v53 = vld [vmem:[#allocation8 + $0x78] sm:$0xff] }
 0x3da   : > { %v2266_v7 = vpop.eup %2265 }
 0x3db   : > { %v1138_v8 = vmul.f32 1.442695, %v1131_v37  ;;  %v1146_v9 = vsel %vm1115_vm2, %v2266_v7, 0.0  ;;  %v2268_v10 = vpop.eup %2267 }
 0x3dc   : > { %1147 = vadd.xlane.f32.xlu0 %v1146_v9  ;;  %v1140_v11 = vsel %vm1115_vm2, %v2268_v10, 0.0 }
 0x3dd   : > { %2269 = vpow2.f32 %v1138_v8 }
 0x3e5   : > { %1141 = vadd.xlane.f32.xlu1 %v1140_v11 }
 0x3ea   : > { %v2270_v12 = vpop.eup %2269 }
 0x3eb   : > { %v1149_v13 = vsel %vm1115_vm2, %v2270_v12, 0.0 }
 0x3ec   : > { %1150 = vadd.xlane.f32.xlu0 %v1149_v13 }
 0x3fe   : > { %v672_v14 = vpop.trf.xlu1 }
 0x402   : > { %v673_v15 = vpop.trf.xlu1 }
 0x406   : > { %v674_v16 = vpop.trf.xlu1 }
 0x40a   : > { %v675_v17 = vpop.trf.xlu1 }
 0x40b   : > { %2107 = vmatpush3.xpose.msk.msra.mxu1 %vm1115_vm2, %v675_v17 }
 0x40c   : > { %2108 = vmatprep.subr.mxu1 %v2475_v0 }
 0x40e   : > { %v676_v18 = vpop.trf.xlu1 }
 0x40f   : > { %2109 = vmatpush3.xpose.msk.msra.mxu1 %vm1115_vm2, %v674_v16 }
 0x410   : > { %2110 = vmatprep.subr.mxu1 %v2475_v0 }
 0x412   : > { %v677_v19 = vpop.trf.xlu1 }
 0x413   : > { %2111 = vmatpush3.xpose.msk.msra.mxu1 %vm1115_vm2, %v673_v15 }
 0x414   : > { %2112 = vmatprep.subr.mxu1 %v2475_v0 }
 0x416   : > { %v678_v20 = vpop.trf.xlu1 }
 0x417   : > { %2113 = vmatpush3.xpose.msk.msra.mxu1 %vm1115_vm2, %v672_v14 }
 0x418   : > { %2117 = vmatprep.subr.mxu1 %v2475_v0 }
 0x41a   : > { %2115 = vmatmul.mubr.msk.f32.vlgmr.msra.gmra.mxu1 %vm1115_vm2, %v2268_v10  ;;  %v679_v21 = vpop.trf.xlu1 }
 0x41b   : > { %2118 = vmatpush3.xpose.msk.msra.mxu1 %vm1115_vm2, %v679_v21  ;;  %2125 = vmatprep.mubr.msk.f32.mxu1 %vm2476_vm0, %v2475_v0 }
 0x41c   : > { %2119 = vmatprep.subr.mxu1 %v2475_v0 }
 0x41e   : > { %v680_v22 = vpop.trf.xlu1 }
 0x41f   : > { %2120 = vmatpush3.xpose.msk.msra.mxu1 %vm1115_vm2, %v678_v20  ;;  %v1946_v20 = vld [vmem:[%s2894_s5] ss:$0 sm:$0xff] }
 0x420   : > { %2121 = vmatprep.subr.mxu1 %v2475_v0 }
 0x422   : > { %v681_v23 = vpop.trf.xlu1 }
 0x423   : > { %2122 = vmatpush3.xpose.msk.msra.mxu1 %vm1115_vm2, %v677_v19 }
 0x424   : > { %2123 = vmatprep.subr.mxu1 %v2475_v0 }
 0x426   : > { %v682_v24 = vpop.trf.xlu1 }
 0x427   : > { %2124 = vmatpush3.xpose.msk.msra.mxu1 %vm1115_vm2, %v676_v18 }
 0x428   : > { %2139 = vmatprep.subr.mxu1 %v2475_v0 }
 0x42a   : > { %v683_v25 = vpop.trf.xlu1  ;;  %2126 = vmatmul.mubr.msk.f32.vlgmr.msra.gmra.mxu1 %vm1115_vm2, %v2264_v2  ;;  %v1663_v2 = vld [vmem:[#allocation8 + $0x18] sm:$0xff] }
 0x42b   : > { %2129 = vmatpush3.xpose.msk.msra.mxu0 %vm1115_vm2, %v683_v25  ;;  %2147 = vmatprep.mubr.msk.f32.mxu1 %vm2476_vm0, %v2475_v0 }
 0x42c   : > { %2130 = vmatprep.subr.mxu0 %v2475_v0 }
 0x42e   : > { %v684_v26 = vpop.trf.xlu1 }
 0x42f   : > { %2131 = vmatpush3.xpose.msk.msra.mxu0 %vm1115_vm2, %v682_v24 }
 0x430   : > { %2132 = vmatprep.subr.mxu0 %v2475_v0 }
 0x432   : > { %v685_v27 = vpop.trf.xlu1 }
 0x433   : > { %2133 = vmatpush3.xpose.msk.msra.mxu0 %vm1115_vm2, %v681_v23 }
 0x434   : > { %2134 = vmatprep.subr.mxu0 %v2475_v0 }
 0x436   : > { %v686_v28 = vpop.trf.xlu1 }
 0x437   : > { %2135 = vmatpush3.xpose.msk.msra.mxu0 %vm1115_vm2, %v680_v22 }
 0x438   : > { %2150 = vmatprep.subr.mxu0 %v2475_v0 }
 0x43a   : > { %2137 = vmatmul.mubr.msk.f32.vlgmr.msra.gmra.mxu0 %vm1115_vm2, %v2266_v7  ;;  %v687_v29 = vpop.trf.xlu1 }
 0x43b   : > { %2140 = vmatpush3.xpose.msk.msra.mxu1 %vm1115_vm2, %v687_v29  ;;  %2182 = vmatprep.mubr.msk.f32.mxu0 %vm2476_vm0, %v2475_v0 }
 0x43c   : > { %2141 = vmatprep.subr.mxu1 %v2475_v0  ;;  %2151 = vmatpush3.msra.mxu0 %v1675_v53 }
 0x43d   : > { %2152 = vmatprep.subr.mxu0 %v2475_v0 }
 0x43e   : > { %2153 = vmatpush3.msra.mxu0 %v1674_v54 }
 0x43f   : > { %2142 = vmatpush3.xpose.msk.msra.mxu1 %vm1115_vm2, %v686_v28  ;;  %2154 = vmatprep.subr.mxu0 %v2475_v0 }
 0x440   : > { %2143 = vmatprep.subr.mxu1 %v2475_v0  ;;  %2155 = vmatpush3.msra.mxu0 %v1673_v55 }
 0x441   : > { %2156 = vmatprep.subr.mxu0 %v2475_v0 }
 0x442   : > { %2157 = vmatpush3.msra.mxu0 %v1672_v56 }
 0x443   : > { %2144 = vmatpush3.xpose.msk.msra.mxu1 %vm1115_vm2, %v685_v27  ;;  %2158 = vmatprep.subr.mxu0 %v2475_v0 }
 0x444   : > { %2145 = vmatprep.subr.mxu1 %v2475_v0  ;;  %2159 = vmatpush3.msra.mxu0 %v1671_v57 }
 0x445   : > { %2160 = vmatprep.subr.mxu0 %v2475_v0 }
 0x446   : > { %2161 = vmatpush3.msra.mxu0 %v1670_v58 }
 0x447   : > { %2146 = vmatpush3.xpose.msk.msra.mxu1 %vm1115_vm2, %v684_v26  ;;  %2162 = vmatprep.subr.mxu0 %v2475_v0 }
 0x448   : > { %2163 = vmatpush3.msra.mxu0 %v1669_v59 }
 0x449   : > { %2164 = vmatprep.subr.mxu0 %v2475_v0 }
 0x44a   : > { %2148 = vmatmul.mubr.msk.f32.vlgmr.msra.gmra.mxu1 %vm1115_vm2, %v2270_v12  ;;  %2165 = vmatpush3.msra.mxu0 %v1668_v60 }
 0x44b   : > { %2166 = vmatprep.subr.mxu0 %v2475_v0 }
 0x44c   : > { %2167 = vmatpush3.msra.mxu0 %v1667_v61 }
 0x44d   : > { %2168 = vmatprep.subr.mxu0 %v2475_v0 }
 0x44e   : > { %2169 = vmatpush3.msra.mxu0 %v1666_v62 }
 0x44f   : > { %2170 = vmatprep.subr.mxu0 %v2475_v0 }
 0x450   : > { %2171 = vmatpush3.msra.mxu0 %v1665_v63 }
 0x451   : > { %2172 = vmatprep.subr.mxu0 %v2475_v0 }
 0x452   : > { %2173 = vmatpush3.msra.mxu0 %v1664_v1 }
 0x453   : > { %2174 = vmatprep.subr.mxu0 %v2475_v0 }
 0x454   : > { %2175 = vmatpush3.msra.mxu0 %v1663_v2 }
 0x455   : > { %v1145_v32 = vpop.xlane.xlu0 %1144  ;;  %2176 = vmatprep.subr.mxu0 %v2475_v0 }
 0x456   : > { %2177 = vmatpush3.msra.mxu0 %v1662_v3 }
 0x457   : > { %2178 = vmatprep.subr.mxu0 %v2475_v0 }
 0x458   : > { %2179 = vmatpush3.msra.mxu0 %v1661_v4 }
 0x459   : > { %2180 = vmatprep.subr.mxu0 %v2475_v0 }
 0x45a   : > { %2181 = vmatpush3.msra.mxu0 %v1660_v5 }
 0x465   : > { %v1148_v40 = vpop.xlane.xlu0 %1147 }
 0x46e   : > { %v1142_v30 = vpop.xlane.xlu1 %1141 }
 0x46f   : > { %2271 = vrcp.f32 %v1142_v30 }
 0x470   : > { %2273 = vrcp.f32 %v1145_v32 }
 0x471   : > { %2275 = vrcp.f32 %v1148_v40  ;;  %v1948_v40 = vld [vmem:[%s2896_s7] ss:$0 sm:$0xff] }
 0x475   : > { %v1151_v45 = vpop.xlane.xlu0 %1150 }
 0x476   : > { %2277 = vrcp.f32 %v1151_v45 }
 0x47c   : > { %v2272_v31 = vpop.eup %2271 }
 0x47d   : > { %v2274_v39 = vpop.eup %2273 }
 0x47e   : > { %v2276_v44 = vpop.eup %2275 }
 0x483   : > { %v2278_v49 = vpop.eup %2277 }
 0x4da   : > { %v1233_v34 = vpop.f32.mrf.mxu1 }
 0x4db   : > { %v1496_v36 = vmul.f32 %v2272_v31, %v1233_v34 }
 0x4dc   : > { %v2116_v38 = vpop.f32.mrf.mxu1 }
 0x4dd   : > { %1500 = vxpose.xlu0.b32.start.end [1/1] (short) (narrow) %v1496_v36, 32 }
 0x4ea   : > { %v1318_v41 = vpop.f32.mrf.mxu1 }
 0x4eb   : > { %v1497_v42 = vmul.f32 %v2274_v39, %v1318_v41 }
 0x4ec   : > { %v2127_v43 = vpop.f32.mrf.mxu1 }
 0x4ed   : > { %1532 = vxpose.xlu0.b32.start.end [1/1] (short) (narrow) %v1497_v42, 32 }
 0x4fa   : > { %v1403_v46 = vpop.f32.mrf.mxu0 }
 0x4fb   : > { %v1498_v47 = vmul.f32 %v2276_v44, %v1403_v46 }
 0x4fc   : > { %v2138_v48 = vpop.f32.mrf.mxu0 }
 0x4fd   : > { %1564 = vxpose.xlu0.b32.start.end [1/1] (short) (narrow) %v1498_v47, 32 }
 0x50a   : > { %v1488_v50 = vpop.f32.mrf.mxu1 }
 0x50b   : > { %v1499_v51 = vmul.f32 %v2278_v49, %v1488_v50 }
 0x50c   : > { %v2149_v52 = vpop.f32.mrf.mxu1 }
 0x50d   : > { %1596 = vxpose.xlu0.b32.start.end [1/1] (short) (narrow) %v1499_v51, 32 }
 0x559   : > { %v1516_v6 = vpop.trf.xlu0 }
 0x55a   : > { %1628 = vxpose.xlu1.b32.start [1/16] (narrow) %v1516_v6, 8 }
 0x55d   : > { %v1517_v35 = vpop.trf.xlu0 }
 0x55e   : > { %1629 = vxpose.xlu1.b32.cont [2/16] (narrow) %v1517_v35, 8 }
 0x561   : > { %v1518_v37 = vpop.trf.xlu0 }
 0x562   : > { %1630 = vxpose.xlu1.b32.cont [3/16] (narrow) %v1518_v37, 8 }
 0x565   : > { %v1519_v7 = vpop.trf.xlu0 }
 0x566   : > { %1631 = vxpose.xlu1.b32.cont [4/16] (narrow) %v1519_v7, 8 }
 0x569   : > { %v1548_v8 = vpop.trf.xlu0 }
 0x56a   : > { %1632 = vxpose.xlu1.b32.cont [5/16] (narrow) %v1548_v8, 8 }
 0x56d   : > { %v1549_v9 = vpop.trf.xlu0 }
 0x56e   : > { %1633 = vxpose.xlu1.b32.cont [6/16] (narrow) %v1549_v9, 8 }
 0x571   : > { %v1550_v10 = vpop.trf.xlu0 }
 0x572   : > { %1634 = vxpose.xlu1.b32.cont [7/16] (narrow) %v1550_v10, 8 }
 0x575   : > { %v1551_v11 = vpop.trf.xlu0 }
 0x576   : > { %1635 = vxpose.xlu1.b32.cont [8/16] (narrow) %v1551_v11, 8 }
 0x579   : > { %v1580_v12 = vpop.trf.xlu0 }
 0x57a   : > { %1636 = vxpose.xlu1.b32.cont [9/16] (narrow) %v1580_v12, 8 }
 0x57d   : > { %v1581_v0 = vpop.trf.xlu0 }
 0x57e   : > { %1637 = vxpose.xlu1.b32.cont [10/16] (narrow) %v1581_v0, 8 }
 0x581   : > { %v1582_v13 = vpop.trf.xlu0 }
 0x582   : > { %1638 = vxpose.xlu1.b32.cont [11/16] (narrow) %v1582_v13, 8 }
 0x585   : > { %v1583_v14 = vpop.trf.xlu0 }
 0x586   : > { %1639 = vxpose.xlu1.b32.cont [12/16] (narrow) %v1583_v14, 8 }
 0x589   : > { %v1612_v15 = vpop.trf.xlu0 }
 0x58a   : > { %1640 = vxpose.xlu1.b32.cont [13/16] (narrow) %v1612_v15, 8 }
 0x58d   : > { %v1613_v16 = vpop.trf.xlu0 }
 0x58e   : > { %1641 = vxpose.xlu1.b32.cont [14/16] (narrow) %v1613_v16, 8 }
 0x591   : > { %v1614_v17 = vpop.trf.xlu0 }
 0x592   : > { %1642 = vxpose.xlu1.b32.cont [15/16] (narrow) %v1614_v17, 8 }
 0x595   : > { %v1615_v18 = vpop.trf.xlu0 }
 0x596   : > { %1643 = vxpose.xlu1.b32.end [16/16] (narrow) %v1615_v18, 8 }
 0x5d6   : > { %v1644_v19 = vpop.trf.xlu1 }
 0x5d7   : > { %2183 = vmatmul.mubr.f32.vlgmr.msra.gmra.mxu0 %v1644_v19 }
 0x697   : > { %v1749_v21 = vpop.f32.mrf.mxu0 }
 0x698   : > { %v1750_v22 = vadd.f32 %v1946_v20, %v1749_v21 }
 0x699   : > { %v2184_v23 = vpop.f32.mrf.mxu0 }
 0x69a   : > { %v1753_v24 = vadd.f32 %v1750_v22, %v2708_v33  ;;  %v1947_v33 = vld [vmem:[%s2895_s6] ss:$0 sm:$0xff] }
 0x69c   : > { %1754 = vadd.xlane.f32.xlu0 %v1753_v24  ;;  %v1757_v25 = vmul.f32 %v1753_v24, %v1753_v24 }
 0x6a0   : > { %1758 = vadd.xlane.f32.xlu0 %v1757_v25 }
 0x725   : > { %v1755_v26 = vpop.xlane.xlu0 %1754 }
 0x726   : > { %v1756_v27 = vmul.f32 0.0078125, %v1755_v26 }
 0x728   : > { %v1761_v29 = vmul.f32 %v1756_v27, %v1756_v27  ;;  %v1764_v36 = vsub.f32 %v1753_v24, %v1756_v27 }
 0x729   : > { %v1759_v28 = vpop.xlane.xlu0 %1758 }
 0x72a   : > { %v1760_v30 = vmul.f32 0.0078125, %v1759_v28 }
 0x72c   : > { %v1762_v31 = vsub.f32 %v1760_v30, %v1761_v29 }
 0x72e   : > { %v1763_v32 = vmax.f32 %v1762_v31, 0.0 }
 0x730   : > { %v1765_v34 = vadd.f32 1e-12, %v1763_v32 }
 0x732   : > { %2279 = vrsqrt.f32 %v1765_v34 }
 0x73f   : > { %v2280_v38 = vpop.eup %2279 }
 0x740   : > { %v1767_v39 = vmul.f32 %v2280_v38, %v1764_v36 }
 0x742   : > { %v1775_v41 = vmul.f32 %v1947_v33, %v1767_v39 }
 0x744   : > { %v1783_v42 = vadd.f32 %v1948_v40, %v1775_v41 }
 0x746   : > { %1784 = vst [vmem:[%s383_s23] sm:$0xff] %v1783_v42 }
 0x747   : > { %2402 = shalt.err (!%p2399_p7)
}
 0x748   : > { %s2403_s20 = scalar_lea.hbm %s1797_s13, 128  ;;  %s2407_s17 = scalar_lea.hbm %s2897_s8, 256 }
 0x749   : > { %p2404_p10 = scmp.ne.s32.totalorder %s1797_s13, %s2403_s20  ;;  %p2408_p11 = scmp.lt.s32.totalorder %s1797_s13, %s2897_s8 }
 0x74a   : > { %p2409_p2 = scmp.lt.s32.totalorder %s2407_s17, %s2403_s20 }
 0x74b   : > { %p2405_p0 = pnand %p2404_p10, %p2925_p3 }
 0x74c   : > { %p2410_p6 = por %p2409_p2, %p2408_p11 }
 0x74d   : > { %p2406_p8 = pneg %p2405_p0 }
 0x74f   : > { %p2411_p12 = pnand %p2410_p6, %p2406_p8 }
 0x751   : > { %2414 = shalt.err (!%p2411_p12)
}
 0x752   : > { %2197 = dma.vmem_to_hbm [thread:$0]  (%p2925_p3), %s1800_s29, 128, %s1797_s13, %s1786_s14  }
 0x753 PF: > { %s1811_s16 = sand.u32 1, %s2453_s27   ;;  %p2926_p9 = scmp.ne.s32.totalorder %s2908_s12, 0 }
 0x754   : > { %p2927_p13 = scmp.ge.s32.totalorder %s2465_s30, 2  ;;  %s1812_s19 = scalar_lea.sflag [#allocation4], %s1811_s16 }
 0x756   : > { %p2214_p5 = pnand %p2927_p13, %p2926_p9 }
 0x758   : > { %p2215_p1 = pneg %p2214_p5 }
 0x75a   : > { %2448 = dma.done.wait (%p2215_p1), %s1812_s19, 128  }
 0x75b   : > { %2450 = vsyncadd (%p2215_p1), %s1812_s19, 4294967168  ;;  %s2928_s2 = sld [smem:[#allocation16_spill]]  ;;  %p25_p4 = scmp.ge.s32.totalorder %s2595_s15, 4  }
 0x75c   : > { %s2929_s29 = sld [smem:[#allocation17_spill]]  ;;  %s2930_s27 = smov %s2457_s28 }
 0x75d   : > { %s2932_s30 = smov %s2595_s15  ;;  %27 = sbr.rel (!%p25_p4) target bundleno = 12 (0xc), region = 118 }
 0x761   : > { %s2931_s28 = smov %s2928_s2 }
 0x762   :  { %1817 = vsyncpa [#allocation3], 1 }
 0x763   :  { %1819 = vsyncpa [#allocation3 + $0x1], 1 }
 0x764   :  { %1820 = vsyncpa [#allocation6], 1 }
 0x765   :  { %1822 = vsyncpa [#allocation6 + $0x1], 1 }
 0x766   :  { %1823 = vsyncpa [#allocation9], 1 }
 0x767   :  { %1824 = vsyncpa [#allocation4], 1 }
 0x768   :  { %1826 = vsyncpa [#allocation4 + $0x1], 1 }

</bundles_post_ra>
